<compile_context>
chip_gen: v5e
topology: v5e:2x2
jax: 0.10.0
libtpu: 0.0.40
codegen_flags: <defaults>
</compile_context>

<pallas_src>
import functools
import math

import jax
import jax.numpy as jnp
from jax import lax
from jax.experimental import pallas as pl
from jax.experimental.pallas import tpu as pltpu

# v7x has only 64 MiB VMEM per core; keep the scoped budget at half of that.
_VMEM_LIMIT = 32 * 1024 * 1024


def _pick_tile(n, cap=256):
    """Largest power-of-two tile <= cap that divides n (falls back to n)."""
    for c in (256, 128, 64, 32, 16, 8):
        if c <= cap and n % c == 0:
            return c
    return n  # small / odd n: full dimension is always a legal block


# ---------------------------------------------------------------------------
# Stage 1: fused QKV projection + RoPE (+ fold 1/sqrt(d_k) into q)
# ---------------------------------------------------------------------------
def _qkv_rope_kernel(x_ref, cos_ref, sin_ref, w_ref, b_ref,
                     q_ref, k_ref, v_ref, *, num_heads, d_k, scale):
    d2 = d_k // 2
    hd = num_heads * d_k
    hd2 = num_heads * d2

    x = x_ref[0].astype(jnp.bfloat16)                                  # (TS, D)
    # One MXU pass: K = D, N = 3*H*d_k (bf16 operands, f32 accumulation).
    qkv = jnp.dot(x, w_ref[...], preferred_element_type=jnp.float32) + b_ref[...]
    q = qkv[:, :hd]
    k = qkv[:, hd:2 * hd]
    v = qkv[:, 2 * hd:]

    cos = cos_ref[0]                                                   # (TS, H*d2)
    sin = sin_ref[0]
    # Lane-dense split-half RoPE over all heads at once (columns were permuted
    # in the wrapper to [all even dims | all odd dims]).
    q1, q2 = q[:, :hd2], q[:, hd2:]
    k1, k2 = k[:, :hd2], k[:, hd2:]
    rq1 = (q1 * cos - q2 * sin) * scale        # fold 1/sqrt(d_k) into q
    rq2 = (q1 * sin + q2 * cos) * scale
    rk1 = k1 * cos - k2 * sin
    rk2 = k1 * sin + k2 * cos

    for h in range(num_heads):                 # static loop: stores only
        lo = h * d2
        q_ref[0, h, :, :] = jnp.concatenate(
            [rq1[:, lo:lo + d2], rq2[:, lo:lo + d2]], axis=-1).astype(q_ref.dtype)
        k_ref[0, h, :, :] = jnp.concatenate(
            [rk1[:, lo:lo + d2], rk2[:, lo:lo + d2]], axis=-1).astype(k_ref.dtype)
        v_ref[0, h, :, :] = v[:, h * d_k:(h + 1) * d_k].astype(v_ref.dtype)


# ---------------------------------------------------------------------------
# Stage 2: flash attention with online softmax
# ---------------------------------------------------------------------------
def _flash_attn_kernel(q_ref, k_ref, v_ref, o_ref, m_ref, l_ref, acc_ref, *, tq, tk):
    i = pl.program_id(2)   # query tile
    j = pl.program_id(3)   # key tile (innermost, "arbitrary")

    @pl.when(j == 0)
    def _():
        m_ref[...] = jnp.full(m_ref.shape, -jnp.inf, jnp.float32)
        l_ref[...] = jnp.zeros(l_ref.shape, jnp.float32)
        acc_ref[...] = jnp.zeros(acc_ref.shape, jnp.float32)

    # Skip key tiles that lie entirely in the causal future of this query tile.
    @pl.when(j * tk < (i + 1) * tq)
    def _():
        q = q_ref[0, 0, :, :]                  # (TQ, d_k) bf16, pre-scaled
        k = k_ref[0, 0, :, :]                  # (TK, d_k) bf16
        s = lax.dot_general(q, k, (((1,), (1,)), ((), ())),
                            preferred_element_type=jnp.float32)       # (TQ, TK)
        row = i * tq + lax.broadcasted_iota(jnp.int32, (tq, tk), 0)
        col = j * tk + lax.broadcasted_iota(jnp.int32, (tq, tk), 1)
        s = jnp.where(row >= col, s, -jnp.inf)

        m_prev = m_ref[...]
        m_new = jnp.maximum(m_prev, jnp.max(s, axis=-1, keepdims=True))
        alpha = jnp.exp(m_prev - m_new)
        p = jnp.exp(s - m_new)                 # unnormalized probabilities (f32)
        l_ref[...] = alpha * l_ref[...] + jnp.sum(p, axis=-1, keepdims=True)
        acc_ref[...] = alpha * acc_ref[...] + jnp.dot(
            p.astype(jnp.bfloat16), v_ref[0, 0, :, :],
            preferred_element_type=jnp.float32)
        m_ref[...] = m_new

    @pl.when(j == pl.num_programs(3) - 1)
    def _():
        # Deferred softmax normalization via EUP approximate reciprocal.
        inv_l = pl.reciprocal(l_ref[...], approx=True)
        o_ref[0, 0, :, :] = (acc_ref[...] * inv_l).astype(o_ref.dtype)


# ---------------------------------------------------------------------------
# Stage 3: merge heads + single full-K output projection
# ---------------------------------------------------------------------------
def _out_proj_kernel(ctx_ref, wo_ref, bo_ref, o_ref, cat_ref, *, num_heads, d_k):
    for h in range(num_heads):                 # static loop: stores only
        cat_ref[:, h * d_k:(h + 1) * d_k] = ctx_ref[0, h, :, :]
    out = jnp.dot(cat_ref[...], wo_ref[...],
                  preferred_element_type=jnp.float32) + bo_ref[...]
    o_ref[0] = out.astype(o_ref.dtype)


# ---------------------------------------------------------------------------
# Wrapper
# ---------------------------------------------------------------------------
def causal_mha_pallas(x, token_positions, params, *, num_heads, theta):
    """x: (B, S, D) f32; token_positions: (B, S) int32."""
    B, S, D = x.shape
    d_k = D // num_heads
    d2 = d_k // 2
    hd = num_heads * d_k
    hd2 = num_heads * d2

    # ---- glue: permute q/k columns to [all heads' even dims | all odd dims] ----
    even = (jnp.arange(num_heads)[:, None] * d_k
            + jnp.arange(0, d_k, 2)[None, :]).reshape(-1)
    odd = (jnp.arange(num_heads)[:, None] * d_k
           + jnp.arange(1, d_k, 2)[None, :]).reshape(-1)
    perm = jnp.concatenate([even, odd])                                # (H*d_k,)

    wq = params["wq"].T[:, perm]
    wk = params["wk"].T[:, perm]
    wv = params["wv"].T
    w_qkv = jnp.concatenate([wq, wk, wv], axis=1).astype(jnp.bfloat16)  # (D, 3*hd)
    b_qkv = jnp.concatenate(
        [params["bq"][perm], params["bk"][perm],
         params["bv"]])[None, :].astype(jnp.float32)                    # (1, 3*hd)
    wo = params["wo"].T.astype(jnp.bfloat16)                            # (hd, D)
    bo = params["bo"][None, :].astype(jnp.float32)                      # (1, D)

    # ---- glue: RoPE cos/sin tables, tiled over heads (lane-dense in kernel) ----
    inv_freq = theta ** (-jnp.arange(0, d_k, 2, dtype=jnp.float32) / d_k)   # (d2,)
    ang = token_positions.astype(jnp.float32)[..., None] * inv_freq         # (B,S,d2)
    cos_t = jnp.tile(jnp.cos(ang), (1, 1, num_heads))                       # (B,S,H*d2)
    sin_t = jnp.tile(jnp.sin(ang), (1, 1, num_heads))

    ts = _pick_tile(S, 256)   # row tile for projection / output projection
    tq = _pick_tile(S, 256)   # flash query tile
    tk = _pick_tile(S, 256)   # flash key tile

    # ---------------- stage 1: fused QKV projection + RoPE -------------------
    head_shape = jax.ShapeDtypeStruct((B, num_heads, S, d_k), jnp.bfloat16)
    q_rot, k_rot, v_heads = pl.pallas_call(
        functools.partial(_qkv_rope_kernel, num_heads=num_heads, d_k=d_k,
                          scale=1.0 / math.sqrt(float(d_k))),
        out_shape=[head_shape, head_shape, head_shape],
        grid_spec=pltpu.PrefetchScalarGridSpec(
            num_scalar_prefetch=0,
            grid=(B, S // ts),
            in_specs=[
                pl.BlockSpec((1, ts, D), lambda b, t: (b, t, 0)),
                pl.BlockSpec((1, ts, hd2), lambda b, t: (b, t, 0)),
                pl.BlockSpec((1, ts, hd2), lambda b, t: (b, t, 0)),
                pl.BlockSpec((D, 3 * hd), lambda b, t: (0, 0)),   # weights (const)
                pl.BlockSpec((1, 3 * hd), lambda b, t: (0, 0)),   # biases  (const)
            ],
            out_specs=[
                pl.BlockSpec((1, num_heads, ts, d_k), lambda b, t: (b, 0, t, 0)),
                pl.BlockSpec((1, num_heads, ts, d_k), lambda b, t: (b, 0, t, 0)),
                pl.BlockSpec((1, num_heads, ts, d_k), lambda b, t: (b, 0, t, 0)),
            ]),
        compiler_params=pltpu.CompilerParams(
            dimension_semantics=("parallel", "parallel"),
            vmem_limit_bytes=_VMEM_LIMIT),
    )(x, cos_t, sin_t, w_qkv, b_qkv)

    # ---------------- stage 2: flash attention (online softmax) --------------
    ctx = pl.pallas_call(
        functools.partial(_flash_attn_kernel, tq=tq, tk=tk),
        out_shape=jax.ShapeDtypeStruct((B, num_heads, S, d_k), jnp.bfloat16),
        grid_spec=pltpu.PrefetchScalarGridSpec(
            num_scalar_prefetch=0,
            grid=(B, num_heads, S // tq, S // tk),
            in_specs=[
                pl.BlockSpec((1, 1, tq, d_k), lambda b, h, i, j: (b, h, i, 0)),
                pl.BlockSpec((1, 1, tk, d_k), lambda b, h, i, j: (b, h, j, 0)),
                pl.BlockSpec((1, 1, tk, d_k), lambda b, h, i, j: (b, h, j, 0)),
            ],
            out_specs=pl.BlockSpec((1, 1, tq, d_k), lambda b, h, i, j: (b, h, i, 0)),
            scratch_shapes=[
                pltpu.VMEM((tq, 1), jnp.float32),     # running max
                pltpu.VMEM((tq, 1), jnp.float32),     # running denominator
                pltpu.VMEM((tq, d_k), jnp.float32),   # running accumulator
            ]),
        compiler_params=pltpu.CompilerParams(
            dimension_semantics=("parallel", "parallel", "parallel", "arbitrary"),
            vmem_limit_bytes=_VMEM_LIMIT),
    )(q_rot, k_rot, v_heads)

    # ---------------- stage 3: head merge + output projection ----------------
    out = pl.pallas_call(
        functools.partial(_out_proj_kernel, num_heads=num_heads, d_k=d_k),
        out_shape=jax.ShapeDtypeStruct((B, S, D), jnp.float32),
        grid_spec=pltpu.PrefetchScalarGridSpec(
            num_scalar_prefetch=0,
            grid=(B, S // ts),
            in_specs=[
                pl.BlockSpec((1, num_heads, ts, d_k), lambda b, t: (b, 0, t, 0)),
                pl.BlockSpec((hd, D), lambda b, t: (0, 0)),
                pl.BlockSpec((1, D), lambda b, t: (0, 0)),
            ],
            out_specs=pl.BlockSpec((1, ts, D), lambda b, t: (b, t, 0)),
            scratch_shapes=[pltpu.VMEM((ts, hd), jnp.bfloat16)]),
        compiler_params=pltpu.CompilerParams(
            dimension_semantics=("parallel", "parallel"),
            vmem_limit_bytes=_VMEM_LIMIT),
    )(ctx, wo, bo)

    return out


# ---------------------------------------------------------------------------
# Pure-JAX reference (mirrors the PyTorch module exactly, f32 end-to-end)
# ---------------------------------------------------------------------------
def _rope_interleaved(x, pos, theta):
    d_k = x.shape[-1]
    inv_freq = theta ** (-jnp.arange(0, d_k, 2, dtype=jnp.float32) / d_k)
    ang = pos.astype(jnp.float32)[:, None, :, None] * inv_freq   # (B,1,S,d_k/2)
    c, s = jnp.cos(ang), jnp.sin(ang)
    xe, xo = x[..., 0::2], x[..., 1::2]
    re = xe * c - xo * s
    ro = xe * s + xo * c
    return jnp.stack([re, ro], axis=-1).reshape(x.shape)


def causal_mha_reference(x, token_positions, params, *, num_heads, theta):
    B, S, D = x.shape
    d_k = D // num_heads
    q = x @ params["wq"].T + params["bq"]
    k = x @ params["wk"].T + params["bk"]
    v = x @ params["wv"].T + params["bv"]
    q = q.reshape(B, S, num_heads, d_k).transpose(0, 2, 1, 3)
    k = k.reshape(B, S, num_heads, d_k).transpose(0, 2, 1, 3)
    v = v.reshape(B, S, num_heads, d_k).transpose(0, 2, 1, 3)
    q = _rope_interleaved(q, token_positions, theta)
    k = _rope_interleaved(k, token_positions, theta)
    scores = jnp.einsum("bhqd,bhkd->bhqk", q, k) / jnp.sqrt(jnp.float32(d_k))
    mask = jnp.tril(jnp.ones((S, S), jnp.float32))[None, None]
    scores = jnp.where(mask == 0, -jnp.inf, scores)
    w = jax.nn.softmax(scores, axis=-1)
    ctx = jnp.einsum("bhqk,bhkd->bhqd", w, v)
    ctx = ctx.transpose(0, 2, 1, 3).reshape(B, S, num_heads * d_k)
    return ctx @ params["wo"].T + params["bo"]


# ---------------------------------------------------------------------------
if __name__ == "__main__":
    B, S = 2, 8
    d_model, num_heads = 32, 4
    theta = 10000.0

    key = jax.random.PRNGKey(0)
    keys = jax.random.split(key, 10)
    hd = d_model  # H * d_k == d_model here

    params = {
        "wq": 0.1 * jax.random.normal(keys[0], (hd, d_model), jnp.float32),
        "bq": 0.1 * jax.random.normal(keys[1], (hd,), jnp.float32),
        "wk": 0.1 * jax.random.normal(keys[2], (hd, d_model), jnp.float32),
        "bk": 0.1 * jax.random.normal(keys[3], (hd,), jnp.float32),
        "wv": 0.1 * jax.random.normal(keys[4], (hd, d_model), jnp.float32),
        "bv": 0.1 * jax.random.normal(keys[5], (hd,), jnp.float32),
        "wo": 0.1 * jax.random.normal(keys[6], (d_model, hd), jnp.float32),
        "bo": 0.1 * jax.random.normal(keys[7], (d_model,), jnp.float32),
    }

    x = jax.random.normal(keys[8], (B, S, d_model), jnp.float32)
    token_positions = jnp.broadcast_to(jnp.arange(S, dtype=jnp.int32), (B, S))

    out = causal_mha_pallas(x, token_positions, params,
                            num_heads=num_heads, theta=theta)
    out = jax.block_until_ready(out)

    ref = causal_mha_reference(x, token_positions, params,
                               num_heads=num_heads, theta=theta)
    ref = jax.block_until_ready(ref)

    # bf16 MXU operands + approx reciprocal -> compare against f32 reference
    # with a mixed-precision tolerance.
    max_err = float(jnp.max(jnp.abs(out - ref)))
    if not jnp.allclose(out, ref, atol=5e-2, rtol=5e-2):
        raise AssertionError(f"mismatch: max abs err {max_err}")

    print("KERNEL_OK")
</pallas_src>

<mosaic_0001>
module attributes {stable_mosaic.version = 11 : i64} {
  func.func @_qkv_rope_kernel(%arg0: i32, %arg1: i32, %arg2: memref<1x8x32xf32, #tpu.memory_space<vmem>>, %arg3: memref<1x8x16xf32, #tpu.memory_space<vmem>>, %arg4: memref<1x8x16xf32, #tpu.memory_space<vmem>>, %arg5: memref<32x96xbf16, #tpu.memory_space<vmem>>, %arg6: memref<1x96xf32, #tpu.memory_space<vmem>>, %arg7: memref<1x4x8x8xbf16, #tpu.memory_space<vmem>>, %arg8: memref<1x4x8x8xbf16, #tpu.memory_space<vmem>>, %arg9: memref<1x4x8x8xbf16, #tpu.memory_space<vmem>>) attributes {dimension_semantics = [#tpu.dimension_semantics<parallel>, #tpu.dimension_semantics<parallel>], iteration_bounds = array<i64: 2, 1>, scalar_prefetch = 0 : i64, scratch_operands = 0 : i64, tpu.core_type = #tpu.core_type<tc>, window_params = [{transform_indices = @transform_0, window_bounds = array<i64: 1, 8, 32>}, {transform_indices = @transform_1, window_bounds = array<i64: 1, 8, 16>}, {transform_indices = @transform_2, window_bounds = array<i64: 1, 8, 16>}, {pipeline_mode = #tpu.pipeline_mode<synchronous>, transform_indices = @transform_3, window_bounds = array<i64: 32, 96>}, {pipeline_mode = #tpu.pipeline_mode<synchronous>, transform_indices = @transform_4, window_bounds = array<i64: 1, 96>}, {transform_indices = @transform_5, window_bounds = array<i64: 1, 4, 8, 8>}, {transform_indices = @transform_6, window_bounds = array<i64: 1, 4, 8, 8>}, {transform_indices = @transform_7, window_bounds = array<i64: 1, 4, 8, 8>}]} {
    %c0 = arith.constant 0 : index
    %c0_0 = arith.constant 0 : index
    %c0_1 = arith.constant 0 : index
    %0 = vector.load %arg2[%c0, %c0_0, %c0_1] : memref<1x8x32xf32, #tpu.memory_space<vmem>>, vector<1x8x32xf32>
    %1 = vector.shape_cast %0 : vector<1x8x32xf32> to vector<8x32xf32>
    %2 = arith.truncf %1 : vector<8x32xf32> to vector<8x32xbf16>
    %c0_2 = arith.constant 0 : index
    %c0_3 = arith.constant 0 : index
    %3 = vector.load %arg5[%c0_2, %c0_3] : memref<32x96xbf16, #tpu.memory_space<vmem>>, vector<32x96xbf16>
    %cst = arith.constant dense<0.000000e+00> : vector<8x96xf32>
    %4 = tpu.matmul %2, %3, %cst {dimension_numbers = #tpu.dot_dimension_numbers<[1], [0], [0], [1], [0, 0, 1, 1], [], []>} : vector<8x32xbf16>, vector<32x96xbf16>, vector<8x96xf32> -> vector<8x96xf32>
    %c0_4 = arith.constant 0 : index
    %c0_5 = arith.constant 0 : index
    %5 = vector.load %arg6[%c0_4, %c0_5] : memref<1x96xf32, #tpu.memory_space<vmem>>, vector<1x96xf32>
    %6 = vector.broadcast %5 : vector<1x96xf32> to vector<8x96xf32>
    %7 = arith.addf %4, %6 : vector<8x96xf32>
    %8 = vector.extract_strided_slice %7 {offsets = [0, 0], sizes = [8, 32], strides = [1, 1]} : vector<8x96xf32> to vector<8x32xf32>
    %9 = vector.extract_strided_slice %7 {offsets = [0, 32], sizes = [8, 32], strides = [1, 1]} : vector<8x96xf32> to vector<8x32xf32>
    %10 = vector.extract_strided_slice %7 {offsets = [0, 64], sizes = [8, 32], strides = [1, 1]} : vector<8x96xf32> to vector<8x32xf32>
    %c0_6 = arith.constant 0 : index
    %c0_7 = arith.constant 0 : index
    %c0_8 = arith.constant 0 : index
    %11 = vector.load %arg3[%c0_6, %c0_7, %c0_8] : memref<1x8x16xf32, #tpu.memory_space<vmem>>, vector<1x8x16xf32>
    %12 = vector.shape_cast %11 : vector<1x8x16xf32> to vector<8x16xf32>
    %c0_9 = arith.constant 0 : index
    %c0_10 = arith.constant 0 : index
    %c0_11 = arith.constant 0 : index
    %13 = vector.load %arg4[%c0_9, %c0_10, %c0_11] : memref<1x8x16xf32, #tpu.memory_space<vmem>>, vector<1x8x16xf32>
    %14 = vector.shape_cast %13 : vector<1x8x16xf32> to vector<8x16xf32>
    %15 = vector.extract_strided_slice %8 {offsets = [0, 0], sizes = [8, 16], strides = [1, 1]} : vector<8x32xf32> to vector<8x16xf32>
    %16 = vector.extract_strided_slice %8 {offsets = [0, 16], sizes = [8, 16], strides = [1, 1]} : vector<8x32xf32> to vector<8x16xf32>
    %17 = vector.extract_strided_slice %9 {offsets = [0, 0], sizes = [8, 16], strides = [1, 1]} : vector<8x32xf32> to vector<8x16xf32>
    %18 = vector.extract_strided_slice %9 {offsets = [0, 16], sizes = [8, 16], strides = [1, 1]} : vector<8x32xf32> to vector<8x16xf32>
    %19 = arith.mulf %15, %12 : vector<8x16xf32>
    %20 = arith.mulf %16, %14 : vector<8x16xf32>
    %21 = arith.subf %19, %20 : vector<8x16xf32>
    %cst_12 = arith.constant 0.353553385 : f32
    %22 = vector.broadcast %cst_12 : f32 to vector<8x16xf32>
    %23 = arith.mulf %21, %22 : vector<8x16xf32>
    %24 = arith.mulf %15, %14 : vector<8x16xf32>
    %25 = arith.mulf %16, %12 : vector<8x16xf32>
    %26 = arith.addf %24, %25 : vector<8x16xf32>
    %cst_13 = arith.constant 0.353553385 : f32
    %27 = vector.broadcast %cst_13 : f32 to vector<8x16xf32>
    %28 = arith.mulf %26, %27 : vector<8x16xf32>
    %29 = arith.mulf %17, %12 : vector<8x16xf32>
    %30 = arith.mulf %18, %14 : vector<8x16xf32>
    %31 = arith.subf %29, %30 : vector<8x16xf32>
    %32 = arith.mulf %17, %14 : vector<8x16xf32>
    %33 = arith.mulf %18, %12 : vector<8x16xf32>
    %34 = arith.addf %32, %33 : vector<8x16xf32>
    %35 = vector.extract_strided_slice %23 {offsets = [0, 0], sizes = [8, 4], strides = [1, 1]} : vector<8x16xf32> to vector<8x4xf32>
    %36 = vector.extract_strided_slice %28 {offsets = [0, 0], sizes = [8, 4], strides = [1, 1]} : vector<8x16xf32> to vector<8x4xf32>
    %37 = tpu.concatenate %35, %36 in 1 : vector<8x4xf32>, vector<8x4xf32> -> vector<8x8xf32>
    %38 = arith.truncf %37 : vector<8x8xf32> to vector<8x8xbf16>
    %c0_14 = arith.constant 0 : index
    %c0_15 = arith.constant 0 : index
    %c0_16 = arith.constant 0 : index
    %c0_17 = arith.constant 0 : index
    %39 = vector.load %arg7[%c0_14, %c0_15, %c0_16, %c0_17] : memref<1x4x8x8xbf16, #tpu.memory_space<vmem>>, vector<1x1x8x8xbf16>
    %40 = vector.shape_cast %39 : vector<1x1x8x8xbf16> to vector<8x8xbf16>
    %41 = vector.shape_cast %38 : vector<8x8xbf16> to vector<1x1x8x8xbf16>
    tpu.vector_store %arg7[%c0_14, %c0_15, %c0_16, %c0_17], %41 {strides = array<i32>} : memref<1x4x8x8xbf16, #tpu.memory_space<vmem>>, vector<1x1x8x8xbf16>,
    %42 = vector.extract_strided_slice %31 {offsets = [0, 0], sizes = [8, 4], strides = [1, 1]} : vector<8x16xf32> to vector<8x4xf32>
    %43 = vector.extract_strided_slice %34 {offsets = [0, 0], sizes = [8, 4], strides = [1, 1]} : vector<8x16xf32> to vector<8x4xf32>
    %44 = tpu.concatenate %42, %43 in 1 : vector<8x4xf32>, vector<8x4xf32> -> vector<8x8xf32>
    %45 = arith.truncf %44 : vector<8x8xf32> to vector<8x8xbf16>
    %c0_18 = arith.constant 0 : index
    %c0_19 = arith.constant 0 : index
    %c0_20 = arith.constant 0 : index
    %c0_21 = arith.constant 0 : index
    %46 = vector.load %arg8[%c0_18, %c0_19, %c0_20, %c0_21] : memref<1x4x8x8xbf16, #tpu.memory_space<vmem>>, vector<1x1x8x8xbf16>
    %47 = vector.shape_cast %46 : vector<1x1x8x8xbf16> to vector<8x8xbf16>
    %48 = vector.shape_cast %45 : vector<8x8xbf16> to vector<1x1x8x8xbf16>
    tpu.vector_store %arg8[%c0_18, %c0_19, %c0_20, %c0_21], %48 {strides = array<i32>} : memref<1x4x8x8xbf16, #tpu.memory_space<vmem>>, vector<1x1x8x8xbf16>,
    %49 = vector.extract_strided_slice %10 {offsets = [0, 0], sizes = [8, 8], strides = [1, 1]} : vector<8x32xf32> to vector<8x8xf32>
    %50 = arith.truncf %49 : vector<8x8xf32> to vector<8x8xbf16>
    %c0_22 = arith.constant 0 : index
    %c0_23 = arith.constant 0 : index
    %c0_24 = arith.constant 0 : index
    %c0_25 = arith.constant 0 : index
    %51 = vector.load %arg9[%c0_22, %c0_23, %c0_24, %c0_25] : memref<1x4x8x8xbf16, #tpu.memory_space<vmem>>, vector<1x1x8x8xbf16>
    %52 = vector.shape_cast %51 : vector<1x1x8x8xbf16> to vector<8x8xbf16>
    %53 = vector.shape_cast %50 : vector<8x8xbf16> to vector<1x1x8x8xbf16>
    tpu.vector_store %arg9[%c0_22, %c0_23, %c0_24, %c0_25], %53 {strides = array<i32>} : memref<1x4x8x8xbf16, #tpu.memory_space<vmem>>, vector<1x1x8x8xbf16>,
    %54 = vector.extract_strided_slice %23 {offsets = [0, 4], sizes = [8, 4], strides = [1, 1]} : vector<8x16xf32> to vector<8x4xf32>
    %55 = vector.extract_strided_slice %28 {offsets = [0, 4], sizes = [8, 4], strides = [1, 1]} : vector<8x16xf32> to vector<8x4xf32>
    %56 = tpu.concatenate %54, %55 in 1 : vector<8x4xf32>, vector<8x4xf32> -> vector<8x8xf32>
    %57 = arith.truncf %56 : vector<8x8xf32> to vector<8x8xbf16>
    %c0_26 = arith.constant 0 : index
    %c1 = arith.constant 1 : index
    %c0_27 = arith.constant 0 : index
    %c0_28 = arith.constant 0 : index
    %58 = vector.load %arg7[%c0_26, %c1, %c0_27, %c0_28] : memref<1x4x8x8xbf16, #tpu.memory_space<vmem>>, vector<1x1x8x8xbf16>
    %59 = vector.shape_cast %58 : vector<1x1x8x8xbf16> to vector<8x8xbf16>
    %60 = vector.shape_cast %57 : vector<8x8xbf16> to vector<1x1x8x8xbf16>
    tpu.vector_store %arg7[%c0_26, %c1, %c0_27, %c0_28], %60 {strides = array<i32>} : memref<1x4x8x8xbf16, #tpu.memory_space<vmem>>, vector<1x1x8x8xbf16>,
    %61 = vector.extract_strided_slice %31 {offsets = [0, 4], sizes = [8, 4], strides = [1, 1]} : vector<8x16xf32> to vector<8x4xf32>
    %62 = vector.extract_strided_slice %34 {offsets = [0, 4], sizes = [8, 4], strides = [1, 1]} : vector<8x16xf32> to vector<8x4xf32>
    %63 = tpu.concatenate %61, %62 in 1 : vector<8x4xf32>, vector<8x4xf32> -> vector<8x8xf32>
    %64 = arith.truncf %63 : vector<8x8xf32> to vector<8x8xbf16>
    %c0_29 = arith.constant 0 : index
    %c1_30 = arith.constant 1 : index
    %c0_31 = arith.constant 0 : index
    %c0_32 = arith.constant 0 : index
    %65 = vector.load %arg8[%c0_29, %c1_30, %c0_31, %c0_32] : memref<1x4x8x8xbf16, #tpu.memory_space<vmem>>, vector<1x1x8x8xbf16>
    %66 = vector.shape_cast %65 : vector<1x1x8x8xbf16> to vector<8x8xbf16>
    %67 = vector.shape_cast %64 : vector<8x8xbf16> to vector<1x1x8x8xbf16>
    tpu.vector_store %arg8[%c0_29, %c1_30, %c0_31, %c0_32], %67 {strides = array<i32>} : memref<1x4x8x8xbf16, #tpu.memory_space<vmem>>, vector<1x1x8x8xbf16>,
    %68 = vector.extract_strided_slice %10 {offsets = [0, 8], sizes = [8, 8], strides = [1, 1]} : vector<8x32xf32> to vector<8x8xf32>
    %69 = arith.truncf %68 : vector<8x8xf32> to vector<8x8xbf16>
    %c0_33 = arith.constant 0 : index
    %c1_34 = arith.constant 1 : index
    %c0_35 = arith.constant 0 : index
    %c0_36 = arith.constant 0 : index
    %70 = vector.load %arg9[%c0_33, %c1_34, %c0_35, %c0_36] : memref<1x4x8x8xbf16, #tpu.memory_space<vmem>>, vector<1x1x8x8xbf16>
    %71 = vector.shape_cast %70 : vector<1x1x8x8xbf16> to vector<8x8xbf16>
    %72 = vector.shape_cast %69 : vector<8x8xbf16> to vector<1x1x8x8xbf16>
    tpu.vector_store %arg9[%c0_33, %c1_34, %c0_35, %c0_36], %72 {strides = array<i32>} : memref<1x4x8x8xbf16, #tpu.memory_space<vmem>>, vector<1x1x8x8xbf16>,
    %73 = vector.extract_strided_slice %23 {offsets = [0, 8], sizes = [8, 4], strides = [1, 1]} : vector<8x16xf32> to vector<8x4xf32>
    %74 = vector.extract_strided_slice %28 {offsets = [0, 8], sizes = [8, 4], strides = [1, 1]} : vector<8x16xf32> to vector<8x4xf32>
    %75 = tpu.concatenate %73, %74 in 1 : vector<8x4xf32>, vector<8x4xf32> -> vector<8x8xf32>
    %76 = arith.truncf %75 : vector<8x8xf32> to vector<8x8xbf16>
    %c0_37 = arith.constant 0 : index
    %c2 = arith.constant 2 : index
    %c0_38 = arith.constant 0 : index
    %c0_39 = arith.constant 0 : index
    %77 = vector.load %arg7[%c0_37, %c2, %c0_38, %c0_39] : memref<1x4x8x8xbf16, #tpu.memory_space<vmem>>, vector<1x1x8x8xbf16>
    %78 = vector.shape_cast %77 : vector<1x1x8x8xbf16> to vector<8x8xbf16>
    %79 = vector.shape_cast %76 : vector<8x8xbf16> to vector<1x1x8x8xbf16>
    tpu.vector_store %arg7[%c0_37, %c2, %c0_38, %c0_39], %79 {strides = array<i32>} : memref<1x4x8x8xbf16, #tpu.memory_space<vmem>>, vector<1x1x8x8xbf16>,
    %80 = vector.extract_strided_slice %31 {offsets = [0, 8], sizes = [8, 4], strides = [1, 1]} : vector<8x16xf32> to vector<8x4xf32>
    %81 = vector.extract_strided_slice %34 {offsets = [0, 8], sizes = [8, 4], strides = [1, 1]} : vector<8x16xf32> to vector<8x4xf32>
    %82 = tpu.concatenate %80, %81 in 1 : vector<8x4xf32>, vector<8x4xf32> -> vector<8x8xf32>
    %83 = arith.truncf %82 : vector<8x8xf32> to vector<8x8xbf16>
    %c0_40 = arith.constant 0 : index
    %c2_41 = arith.constant 2 : index
    %c0_42 = arith.constant 0 : index
    %c0_43 = arith.constant 0 : index
    %84 = vector.load %arg8[%c0_40, %c2_41, %c0_42, %c0_43] : memref<1x4x8x8xbf16, #tpu.memory_space<vmem>>, vector<1x1x8x8xbf16>
    %85 = vector.shape_cast %84 : vector<1x1x8x8xbf16> to vector<8x8xbf16>
    %86 = vector.shape_cast %83 : vector<8x8xbf16> to vector<1x1x8x8xbf16>
    tpu.vector_store %arg8[%c0_40, %c2_41, %c0_42, %c0_43], %86 {strides = array<i32>} : memref<1x4x8x8xbf16, #tpu.memory_space<vmem>>, vector<1x1x8x8xbf16>,
    %87 = vector.extract_strided_slice %10 {offsets = [0, 16], sizes = [8, 8], strides = [1, 1]} : vector<8x32xf32> to vector<8x8xf32>
    %88 = arith.truncf %87 : vector<8x8xf32> to vector<8x8xbf16>
    %c0_44 = arith.constant 0 : index
    %c2_45 = arith.constant 2 : index
    %c0_46 = arith.constant 0 : index
    %c0_47 = arith.constant 0 : index
    %89 = vector.load %arg9[%c0_44, %c2_45, %c0_46, %c0_47] : memref<1x4x8x8xbf16, #tpu.memory_space<vmem>>, vector<1x1x8x8xbf16>
    %90 = vector.shape_cast %89 : vector<1x1x8x8xbf16> to vector<8x8xbf16>
    %91 = vector.shape_cast %88 : vector<8x8xbf16> to vector<1x1x8x8xbf16>
    tpu.vector_store %arg9[%c0_44, %c2_45, %c0_46, %c0_47], %91 {strides = array<i32>} : memref<1x4x8x8xbf16, #tpu.memory_space<vmem>>, vector<1x1x8x8xbf16>,
    %92 = vector.extract_strided_slice %23 {offsets = [0, 12], sizes = [8, 4], strides = [1, 1]} : vector<8x16xf32> to vector<8x4xf32>
    %93 = vector.extract_strided_slice %28 {offsets = [0, 12], sizes = [8, 4], strides = [1, 1]} : vector<8x16xf32> to vector<8x4xf32>
    %94 = tpu.concatenate %92, %93 in 1 : vector<8x4xf32>, vector<8x4xf32> -> vector<8x8xf32>
    %95 = arith.truncf %94 : vector<8x8xf32> to vector<8x8xbf16>
    %c0_48 = arith.constant 0 : index
    %c3 = arith.constant 3 : index
    %c0_49 = arith.constant 0 : index
    %c0_50 = arith.constant 0 : index
    %96 = vector.load %arg7[%c0_48, %c3, %c0_49, %c0_50] : memref<1x4x8x8xbf16, #tpu.memory_space<vmem>>, vector<1x1x8x8xbf16>
    %97 = vector.shape_cast %96 : vector<1x1x8x8xbf16> to vector<8x8xbf16>
    %98 = vector.shape_cast %95 : vector<8x8xbf16> to vector<1x1x8x8xbf16>
    tpu.vector_store %arg7[%c0_48, %c3, %c0_49, %c0_50], %98 {strides = array<i32>} : memref<1x4x8x8xbf16, #tpu.memory_space<vmem>>, vector<1x1x8x8xbf16>,
    %99 = vector.extract_strided_slice %31 {offsets = [0, 12], sizes = [8, 4], strides = [1, 1]} : vector<8x16xf32> to vector<8x4xf32>
    %100 = vector.extract_strided_slice %34 {offsets = [0, 12], sizes = [8, 4], strides = [1, 1]} : vector<8x16xf32> to vector<8x4xf32>
    %101 = tpu.concatenate %99, %100 in 1 : vector<8x4xf32>, vector<8x4xf32> -> vector<8x8xf32>
    %102 = arith.truncf %101 : vector<8x8xf32> to vector<8x8xbf16>
    %c0_51 = arith.constant 0 : index
    %c3_52 = arith.constant 3 : index
    %c0_53 = arith.constant 0 : index
    %c0_54 = arith.constant 0 : index
    %103 = vector.load %arg8[%c0_51, %c3_52, %c0_53, %c0_54] : memref<1x4x8x8xbf16, #tpu.memory_space<vmem>>, vector<1x1x8x8xbf16>
    %104 = vector.shape_cast %103 : vector<1x1x8x8xbf16> to vector<8x8xbf16>
    %105 = vector.shape_cast %102 : vector<8x8xbf16> to vector<1x1x8x8xbf16>
    tpu.vector_store %arg8[%c0_51, %c3_52, %c0_53, %c0_54], %105 {strides = array<i32>} : memref<1x4x8x8xbf16, #tpu.memory_space<vmem>>, vector<1x1x8x8xbf16>,
    %106 = vector.extract_strided_slice %10 {offsets = [0, 24], sizes = [8, 8], strides = [1, 1]} : vector<8x32xf32> to vector<8x8xf32>
    %107 = arith.truncf %106 : vector<8x8xf32> to vector<8x8xbf16>
    %c0_55 = arith.constant 0 : index
    %c3_56 = arith.constant 3 : index
    %c0_57 = arith.constant 0 : index
    %c0_58 = arith.constant 0 : index
    %108 = vector.load %arg9[%c0_55, %c3_56, %c0_57, %c0_58] : memref<1x4x8x8xbf16, #tpu.memory_space<vmem>>, vector<1x1x8x8xbf16>
    %109 = vector.shape_cast %108 : vector<1x1x8x8xbf16> to vector<8x8xbf16>
    %110 = vector.shape_cast %107 : vector<8x8xbf16> to vector<1x1x8x8xbf16>
    tpu.vector_store %arg9[%c0_55, %c3_56, %c0_57, %c0_58], %110 {strides = array<i32>} : memref<1x4x8x8xbf16, #tpu.memory_space<vmem>>, vector<1x1x8x8xbf16>,
    return
  }
  func.func @transform_0(%arg0: i32, %arg1: i32) -> (i32, i32, i32) {
    %c0_i32 = arith.constant 0 : i32
    %c0_i32_0 = arith.constant 0 : i32
    return %arg0, %arg1, %c0_i32 : i32, i32, i32
  }
  func.func @transform_1(%arg0: i32, %arg1: i32) -> (i32, i32, i32) {
    %c0_i32 = arith.constant 0 : i32
    %c0_i32_0 = arith.constant 0 : i32
    return %arg0, %arg1, %c0_i32 : i32, i32, i32
  }
  func.func @transform_2(%arg0: i32, %arg1: i32) -> (i32, i32, i32) {
    %c0_i32 = arith.constant 0 : i32
    %c0_i32_0 = arith.constant 0 : i32
    return %arg0, %arg1, %c0_i32 : i32, i32, i32
  }
  func.func @transform_3(%arg0: i32, %arg1: i32) -> (i32, i32) {
    %c0_i32 = arith.constant 0 : i32
    %c0_i32_0 = arith.constant 0 : i32
    %c0_i32_1 = arith.constant 0 : i32
    return %c0_i32, %c0_i32_0 : i32, i32
  }
  func.func @transform_4(%arg0: i32, %arg1: i32) -> (i32, i32) {
    %c0_i32 = arith.constant 0 : i32
    %c0_i32_0 = arith.constant 0 : i32
    %c0_i32_1 = arith.constant 0 : i32
    return %c0_i32, %c0_i32_0 : i32, i32
  }
  func.func @transform_5(%arg0: i32, %arg1: i32) -> (i32, i32, i32, i32) {
    %c0_i32 = arith.constant 0 : i32
    %c0_i32_0 = arith.constant 0 : i32
    %c0_i32_1 = arith.constant 0 : i32
    return %arg0, %c0_i32, %arg1, %c0_i32_0 : i32, i32, i32, i32
  }
  func.func @transform_6(%arg0: i32, %arg1: i32) -> (i32, i32, i32, i32) {
    %c0_i32 = arith.constant 0 : i32
    %c0_i32_0 = arith.constant 0 : i32
    %c0_i32_1 = arith.constant 0 : i32
    return %arg0, %c0_i32, %arg1, %c0_i32_0 : i32, i32, i32, i32
  }
  func.func @transform_7(%arg0: i32, %arg1: i32) -> (i32, i32, i32, i32) {
    %c0_i32 = arith.constant 0 : i32
    %c0_i32_0 = arith.constant 0 : i32
    %c0_i32_1 = arith.constant 0 : i32
    return %arg0, %c0_i32, %arg1, %c0_i32_0 : i32, i32, i32, i32
  }
}

</mosaic_0001>

<bundles_post_ra>
// kernel: tpu_custom_call.1
= control target key start
LH: loop header
LB: loop body
LE: loop exit
PB: predicated region body
PF: predicated region fallthrough
CT: control target
= control target key end

     0   :  { %s1729_s0 = inlined_call_operand.hbm [shape: f32[2,8,32], index: 0, kind: input, shape index: {}]   ;;  %s1730_s1 = inlined_call_operand.hbm [shape: f32[2,8,16], index: 1, kind: input, shape index: {}]   ;;  %s1731_s2 = inlined_call_operand.hbm [shape: f32[2,8,16], index: 2, kind: input, shape index: {}]   ;;  %s1732_s3 = inlined_call_operand.hbm [shape: bf16[32,96], index: 3, kind: input, shape index: {}]   ;;  %s1733_s4 = inlined_call_operand.vmem [shape: f32[1,96], index: 4, kind: input, shape index: {}]   ;;  %s1734_s5 = inlined_call_operand.hbm [shape: bf16[2,4,8,8], index: 5, kind: output, shape index: {0}]   ;;  %s1735_s6 = inlined_call_operand.hbm [shape: bf16[2,4,8,8], index: 6, kind: output, shape index: {1}]   ;;  %s1736_s7 = inlined_call_operand.hbm [shape: bf16[2,4,8,8], index: 7, kind: output, shape index: {2}]  }
   0x1   :  { %1746 = sst [smem:[#allocation25_spill]] %s1730_s1 }
   0x2   :  { %1747 = sst [smem:[#allocation26_spill]] %s1732_s3 }
   0x3   :  { %1748 = sst [smem:[#allocation27_spill]] %s1736_s7 }
   0x4   :  { %13 = vsyncpa [#allocation3], 0 }
   0x5   :  { %15 = vsyncpa [#allocation3 + $0x1], 0 }
   0x6   :  { %16 = vsyncpa [#allocation6], 0 }
   0x7   :  { %18 = vsyncpa [#allocation6 + $0x1], 0 }
   0x8   :  { %19 = vsyncpa [#allocation9], 0 }
   0x9   :  { %20 = vsyncpa [#allocation4], 0 }
   0xa   :  { %22 = vsyncpa [#allocation4 + $0x1], 0 }
   0xb   :  { %23 = vsyncpa [#allocation12], 0 }
   0xc   :  { %25 = vsyncpa [#allocation12 + $0x1], 0  ;;  %s1414_s24 = smov 0   ;;  %s1416_s25 = smov 0  }
   0xd   :  { %s1418_s26 = smov 0   ;;  %s1420_s27 = smov 0  }
   0xe   :  { %s1422_s28 = smov 0   ;;  %s1424_s29 = smov 0  }
   0xf LB: > { %1749 = sst [smem:[#allocation19_spill]] %s1333_s24  ;;  %s1445_s30 = sadd.s32 4294967295, %s1353_s29   ;;  %s1353_s29 = sphi %s1424_s29, %s31_s29   ;;  %s1349_s28 = sphi %s1422_s28, %s1771_s28   ;;  %s1345_s27 = sphi %s1420_s27, %s1770_s27   ;;  %s1341_s26 = sphi %s1418_s26, %s1774_s26   ;;  %s1337_s25 = sphi %s1416_s25, %s1773_s25   ;;  %s1333_s24 = sphi %s1414_s24, %s1772_s24  }
  0x10   : > { %1750 = sst [smem:[#allocation20_spill]] %s1349_s28  ;;  %s1737_s8 = sadd.s32 4294967294, %s1353_s29  }
  0x11   : > { %1751 = sst [smem:[#allocation21_spill]] %s1353_s29  ;;  %s43_s9 = sadd.s32 1, %s1349_s28 }
  0x12   : > { %s52_s10 = sadd.s32 1, %s1341_s26  ;;  %p45_p0 = scmp.ge.s32.totalorder %s43_s9, 2 }
  0x13   : > { %p59_p1 = scmp.ne.s32.totalorder %s1341_s26, %s1337_s25  ;;  %p60_p2 = scmp.eq.s32.totalorder %s1353_s29, 0 }
  0x14   : > { %p65_p3 = scmp.ne.s32.totalorder %s1337_s25, %s1333_s24  ;;  %s1776_s9 = smov (%p45_p0, %s43_s9), 0 }
  0x15   : > { %1752 = sst [smem:[#allocation22_spill]] %s1776_s9  ;;  %p1457_p4 = por %p60_p2, %p59_p1 }
  0x16   : > { %p189_p5 = scmp.eq.s32.totalorder %s1445_s30, 1  ;;  %s47_s12 = ssub.s32 %s1349_s28, %s1776_s9 }
  0x17   : > { %p195_p6 = scmp.eq.s32.totalorder %s1737_s8, 1  ;;  %p50_p7 = scmp.eq.s32.totalorder %s47_s12, 0 }
  0x18   : > { %p1466_p8 = por %p189_p5, %p59_p1  ;;  %p897_p10 = scmp.ge.s32.totalorder %s1353_s29, 2 }
  0x19   : > { %p1473_p9 = por %p195_p6, %p65_p3  ;;  %p987_p11 = scmp.lt.s32.totalorder %s1353_s29, 2 }
  0x1a   : > { %s1478_s15 = scalar_select %p50_p7, %s1341_s26, %s52_s10  }
  0x1b   : > { %s1755_s14 = scalar_select %p1473_p9, 1, 0 }
  0x1c   : > { %1757 = sst [smem:[#allocation24_spill]] %s1478_s15  ;;  %s1738_s16 = sand.u32 1, %s1341_s26  }
  0x1d   : > { %1756 = sst [smem:[#allocation23_spill]] %s1755_s14  ;;  %s1484_s17 = sshll.u32 %s1349_s28, 3 }
  0x1e   : > { %s1488_s18 = sshll.u32 %s1738_s16, 3  ;;  %p1492_p12 = pnand %p987_p11, %p1457_p4 }
  0x1f   : > { %s308_s20 = sand.u32 1, %s1353_s29   ;;  %s1759_s1 = sld [smem:[#allocation25_spill]] }
  0x20   : > { %s312_s10 = scalar_lea.vmem [#allocation5], %s1488_s18  ;;  %s1502_s16 = scalar_lea.sflag [#allocation6], %s308_s20 }
  0x21   : > { %s321_s12 = sshll.u32 %s312_s10, 4  ;;  %p66_p13 = scmp.eq.s32.totalorder %s1445_s30, 0  ;;  %s322_s12 = int_to_ptr.vmem [resolvable:$true] %s321_s12 }
  0x22   : > { %p895_p0 = scmp.ge.s32.totalorder %s1353_s29, 1  ;;  %p258_p1 = scmp.lt.s32.totalorder %s1353_s29, 3 }
  0x23   : > { %p1515_p2 = por %p66_p13, %p65_p3  ;;  %s1761_s3 = sld [smem:[#allocation26_spill]] }
  0x24   : > { %p1522_p4 = pnand %p895_p0, %p258_p1  ;;  %s297_s22 = scalar_lea.hbm %s1729_s0, %s1484_s17 }
  0x25   : > { %s317_s23 = scalar_lea.hbm %s1759_s1, %s1484_s17  ;;  %s299_s1 = sshll.u32 %s297_s22, 4  ;;  %s300_s1 = int_to_ptr.hbm [resolvable:$true] %s299_s1 }
  0x26   : > { %s319_s8 = sshll.u32 %s317_s23, 4  ;;  %p962_p5 = pneg %p1522_p4  ;;  %s320_s8 = int_to_ptr.hbm [resolvable:$true] %s319_s8 }
  0x27   : > { %972 = dma.hbm_to_vmem [thread:$0]  (!%p1492_p12), %s320_s8, 128, %s322_s12, %s1502_s16  }
  0x28   : > { %s1355_s8 = smov [#allocation8]   ;;  %p963_p3 = pnand %p962_p5, %p66_p13 }
  0x29   : > { %s269_s23 = sshll.u32 %s1761_s3, 4  ;;  %s271_s10 = sshll.u32 %s1355_s8, 4  ;;  %s270_s23 = int_to_ptr.hbm [resolvable:$true] %s269_s23  ;;  %s272_s10 = int_to_ptr.vmem [resolvable:$true] %s271_s10 }
  0x2a   : > { %s1356_s3 = smov 64   ;;  %s1357_s9 = smov 4  }
  0x2b   : > { %965 = dma.hbm_to_vmem [thread:$0]  (!%p963_p3), %s270_s23, 256, %s272_s10, [#allocation9], %s1356_s3, %s1356_s3, %s1357_s9  }
  0x2c   : > { %s292_s28 = scalar_lea.vmem [#allocation2], %s1488_s18  ;;  %s1763_s29 = sand.u32 1, %s1341_s26  }
  0x2d   : > { %s301_s15 = sshll.u32 %s292_s28, 4  ;;  %s289_s14 = scalar_lea.sflag [#allocation3], %s1763_s29  ;;  %s302_s15 = int_to_ptr.vmem [resolvable:$true] %s301_s15 }
  0x2e   : > { %969 = dma.hbm_to_vmem [thread:$0]  (!%p1492_p12), %s300_s1, 128, %s302_s15, %s289_s14  }
  0x2f   : > { %s337_s7 = scalar_lea.hbm %s1731_s2, %s1484_s17  ;;  %s332_s12 = scalar_lea.vmem [#allocation7], %s1488_s18 }
  0x30   : > { %s341_s21 = sshll.u32 %s332_s12, 4  ;;  %s339_s22 = sshll.u32 %s337_s7, 4  ;;  %s342_s21 = int_to_ptr.vmem [resolvable:$true] %s341_s21  ;;  %s340_s22 = int_to_ptr.hbm [resolvable:$true] %s339_s22 }
  0x31   : > { %975 = dma.hbm_to_vmem [thread:$0]  (!%p1492_p12), %s340_s22, 128, %s342_s21, %s1502_s16  }
  0x32   : > { %350 = sbr.rel (%p1522_p4) target bundleno = 484 (0x1e4), region = 40  ;;  %s1550_s3 = sand.u32 (!%p1522_p4), 1, %s1337_s25  }
  0x33   : > { %s905_s1 = sshll.u32 (!%p1522_p4), %s1550_s3, 3  ;;  %s353_s28 = scalar_lea.sflag (!%p1522_p4), [#allocation3], %s1550_s3 }
  0x34   : > { %s356_s24 = scalar_lea.vmem (!%p1522_p4), [#allocation2], %s905_s1 }
  0x37   : > { %1312 = dma.done.wait (%p1515_p2), %s353_s28, 128  }
  0x38   : > { %1314 = vsyncadd (%p1515_p2), %s353_s28, 4294967168  ;;  %s362_s7 = sand.u32 1, %s1445_s30   ;;  %s366_s9 = scalar_lea.vmem [#allocation5], %s905_s1 }
  0x39   : > { %s363_s29 = scalar_lea.sflag [#allocation6], %s362_s7 }
  0x3a   : > { %1316 = dma.done.wait (%p1515_p2), %s363_s29, 256  }
  0x3b   : > { %1318 = vsyncadd (%p1515_p2), %s363_s29, 4294967040  ;;  %s376_s14 = scalar_lea.vmem [#allocation7], %s905_s1 }
  0x3c   : > { %1320 = dma.done.wait (%p66_p13), [#allocation9], 256  }
  0x3d   : > { %1322 = vsyncadd (%p66_p13), [#allocation9], 4294967040  ;;  %v942_v0 = vld [vmem:[#allocation8 + $0x8] sm:$0xff]  ;;  %v474_v1 = vld [vmem:[%s376_s14] sm:$0xff]  ;;  %s1358_s15 = smov 48   ;;  %s1359_s16 = smov 16  }
  0x3e   : > { %466 = vmatpush.bf16.msra.mxu0 %v942_v0  ;;  %v941_v2 = vld [vmem:[#allocation8] sm:$0xff]  ;;  %v434_v3 = vld [vmem:[%s356_s24] sm:$0xff]  ;;  %503 = vrot.lane.b32.xlu1 %v474_v1, %s1358_s15  ;;  %s1360_s17 = smov 32   ;;  %vm456_vm0 = vcmask 261120   ;;  %s1361_s11 = smov 112   ;;  %vm532_vm1 = vcmask 60416  }
  0x3f   : > { %v473_v4 = vld [vmem:[%s366_s9] sm:$0xff]  ;;  %477 = vrot.lane.b32.xlu0 %v474_v1, %s1359_s16  ;;  %v435_v5 = vpack.c.bf16 %v434_v3, %v434_v3  ;;  %v1082_v7 = vld [vmem:[%s1733_s4] ss:$0 sm:$0xff]  ;;  %s1362_s23 = smov 64   ;;  %s1363_s20 = smov 84   ;;  %vm529_vm2 = vcmask 31744  }
  0x40   : > { %499 = vrot.lane.b32.xlu2 %v473_v4, %s1360_s17  ;;  %s1576_s10 = sshll.u32 %s1550_s3, 4  ;;  %s1364_s8 = smov 4  }
  0x41   : > { %s1580_s12 = scalar_lea.vmem [#allocation13], %s1576_s10  ;;  %s1365_s21 = smov 100  }
  0x42   : > { %467 = vmatpush.bf16.msra.mxu0 %v941_v2  ;;  %s1366_s22 = smov 116   ;;  %s1367_s1 = smov 96  }
  0x43   : > { %s1368_s28 = smov 88   ;;  %s1369_s24 = smov 40  }
  0x44   : > { %s1370_s29 = smov 92   ;;  %s1371_s9 = smov 120  }
  0x45   : > { %920 = vmatmul.msk.bf16.vlgmr.msra.gmra.mxu0 %vm456_vm0, %v435_v5  ;;  %s1372_s14 = smov 124   ;;  %s1606_s18 = sshll.u32 %s1345_s27, 4 }
  0x46   : > { %516 = vrot.lane.b32.xlu1 %v473_v4, %s1358_s15  ;;  %s1223_s19 = scalar_lea.hbm %s1735_s6, 32 }
  0x47   : > { %489 = vrot.lane.b32.xlu0 %v473_v4, %s1359_s16  ;;  %s1373_s16 = smov 56  }
  0x48   : > { %512 = vrot.lane.b32.xlu2 %v474_v1, %s1360_s17  ;;  %s1587_s17 = scalar_lea.vmem [#allocation11], %s1576_s10 }
  0x9a   : > { %v500_v19 = vpop.permute.xlu2 %499 }
  0xa2   : > { %v513_v20 = vpop.permute.xlu2 %512 }
  0xb0   : > { %v504_v8 = vpop.permute.xlu1 %503 }
  0xb1   : > { %v478_v6 = vpop.permute.xlu0 %477 }
  0xb8   : > { %v517_v16 = vpop.permute.xlu1 %516 }
  0xb9   : > { %v490_v10 = vpop.permute.xlu0 %489 }
  0xc2   : > { %v469_v9 = vpop.f32.mrf.mxu0 }
  0xc3   : > { %v470_v11 = vadd.f32 %v1082_v7, %v469_v9 }
  0xc5   : > { %v492_v12 = vmul.f32 %v490_v10, %v470_v11  ;;  %v506_v13 = vmul.f32 %v504_v8, %v470_v11  ;;  %v480_v14 = vmul.f32 %v478_v6, %v470_v11  ;;  %v545_v17 = vpack.c.bf16 %v470_v11, %v470_v11 }
  0xc6   : > { %v519_v18 = vmul.f32 %v517_v16, %v470_v11  ;;  %v502_v21 = vmul.f32 %v500_v19, %v470_v11  ;;  %v487_v24 = vmul.f32 %v474_v1, %v470_v11  ;;  %v475_v29 = vmul.f32 %v473_v4, %v470_v11 }
  0xc7   : > { %508 = vrot.lane.b32.xlu2 %v506_v13, %s1361_s11  ;;  %494 = vrot.lane.b32.xlu1 %v492_v12, %s1361_s11  ;;  %v515_v31 = vmul.f32 %v513_v20, %v470_v11 }
  0xc8   : > { %482 = vrot.lane.b32.xlu0 %v480_v14, %s1361_s11 }
  0xca   : > { %v471_v15 = vpop.f32.mrf.mxu0 }
  0xcf   : > { %547 = vrot.lane.b32.xlu1 %v545_v17, %s1362_s23 }
  0xd0   : > { %521 = vrot.lane.b32.xlu0 %v519_v18, %s1361_s11 }
 0x121   : > { %v509_v22 = vpop.permute.xlu2 %508 }
 0x122   : > { %v511_v23 = vsub.f32 %v502_v21, %v509_v22 }
 0x124   : > { %609 = vrot.lane.b32.xlu1 %v511_v23, %s1363_s20  ;;  %s665_s20 = scalar_lea.hbm %s1735_s6, %s1606_s18 }
 0x125   : > { %s1615_s27 = sshll.u32 %s665_s20, 4  ;;  %s669_s27 = int_to_ptr.hbm [resolvable:$true] %s1615_s27 }
 0x139   : > { %v495_v25 = vpop.permute.xlu1 %494 }
 0x13a   : > { %v497_v26 = vadd.f32 %v495_v25, %v487_v24  ;;  %v483_v27 = vpop.permute.xlu0 %482 }
 0x13b   : > { %v485_v30 = vsub.f32 %v475_v29, %v483_v27 }
 0x13c   : > { %v498_v28 = vmul.f32 0.35355338, %v497_v26 }
 0x13d   : > { %v486_v35 = vmul.f32 0.35355338, %v485_v30 }
 0x13e   : > { %526 = vrot.lane.b32.xlu1 %v498_v28, %s1364_s8 }
 0x13f   : > { %v1077_v37 = vpack.i.bf16 %v498_v28, %v486_v35 }
 0x141   : > { %v548_v32 = vpop.permute.xlu1 %547 }
 0x142   : > { %550 = vst.msk [vmem:[%s1580_s12] sm:$0xf] %vm532_vm1, %v548_v32  ;;  %v522_v33 = vpop.permute.xlu0 %521 }
 0x143   : > { %v524_v34 = vadd.f32 %v522_v33, %v515_v31 }
 0x145   : > { %539 = vrot.lane.b32.xlu0 %v524_v34, %s1365_s21  ;;  %v1057_v36 = vpack.i.bf16 %v524_v34, %v511_v23 }
 0x146   : > { %599 = vrot.lane.b32.xlu1 %v486_v35, %s1366_s22 }
 0x147   : > { %1058 = vrot.lane.b32.xlu2 %v1057_v36, %s1367_s1 }
 0x14d   : > { %1068 = vrot.lane.b32.xlu0 %v1057_v36, %s1368_s28  ;;  %s647_s28 = scalar_lea.hbm %s1734_s5, %s1606_s18 }
 0x14e   : > { %619 = vrot.lane.b32.xlu1 %v545_v17, %s1369_s24  ;;  %s1631_s24 = scalar_lea.sflag [#allocation12], %s362_s7 }
 0x14f   : > { %1063 = vrot.lane.b32.xlu2 %v1057_v36, %s1370_s29  ;;  %s1217_s29 = sshra.s32 %s669_s27, 4  ;;  %s1218_s29 = int_to_ptr.hbm [resolvable:$true] %s1217_s29 }
 0x150   : > { %p1224_p12 = scmp.lt.s32.totalorder %s1218_s29, %s1735_s6 }
 0x155   : > { %1078 = vrot.lane.b32.xlu0 %v1077_v37, %s1371_s9  ;;  %s1219_s9 = scalar_lea.hbm %s1218_s29, 16 }
 0x156   : > { %p1220_p6 = scmp.ne.s32.totalorder %s1218_s29, %s1219_s9  ;;  %p1225_p13 = scmp.lt.s32.totalorder %s1223_s19, %s1219_s9 }
 0x157   : > { %1073 = vrot.lane.b32.xlu2 %v1077_v37, %s1372_s14 }
 0x158   : > { %p1221_p7 = pnand %p1220_p6, %p1466_p8  ;;  %p1226_p0 = por %p1225_p13, %p1224_p12 }
 0x15a   : > { %p1222_p11 = pneg %p1221_p7 }
 0x15c   : > { %p1227_p1 = pnand %p1226_p0, %p1222_p11 }
 0x15d   : > { %594 = vrot.lane.b32.xlu0 %v545_v17, %s1358_s15  ;;  %s1593_s15 = scalar_lea.vmem [#allocation10], %s1576_s10  ;;  %s666_s10 = sshll.u32 %s1587_s17, 4  ;;  %s667_s10 = int_to_ptr.vmem [resolvable:$true] %s666_s10 }
 0x15e   : > { %s648_s21 = sshll.u32 %s1593_s15, 4  ;;  %s1653_s21 = int_to_ptr.vmem [resolvable:$true] %s648_s21 }
 0x15f   : > { %569 = vrot.lane.b32.xlu2 %v545_v17, %s1373_s16 }
 0x196   : > { %v610_v39 = vpop.permute.xlu1 %609 }
 0x1a1   : > { %v1059_v38 = vpop.permute.xlu2 %1058 }
 0x1a2   : > { %v1061_v41 = vunpack.i.h.bf16 %v1059_v38  ;;  %v1060_v52 = vunpack.i.l.bf16 %v1059_v38 }
 0x1a9   : > { %v1064_v40 = vpop.permute.xlu2 %1063 }
 0x1aa   : > { %v1065_v42 = vunpack.i.l.bf16 %v1064_v40  ;;  %v1066_v59 = vunpack.i.h.bf16 %v1064_v40 }
 0x1ac   : > { %v565_v43 = vsel %vm529_vm2, %v1065_v42, %v1061_v41 }
 0x1ad   : > { %v566_v44 = vpack.c.bf16 %v565_v43, %v565_v43 }
 0x1af   : > { %922 = vst.msk [vmem:[%s1587_s17 + $0x4] sm:$0xf] %vm532_vm1, %v566_v44 }
 0x1b0   : > { %v527_v45 = vpop.permute.xlu1 %526 }
 0x1b1   : > { %v530_v46 = vsel %vm529_vm2, %v486_v35, %v527_v45  ;;  %v1074_v47 = vpop.permute.xlu2 %1073 }
 0x1b2   : > { %v531_v48 = vpack.c.bf16 %v530_v46, %v530_v46  ;;  %v1075_v49 = vunpack.i.l.bf16 %v1074_v47 }
 0x1b4   : > { %533 = vst.msk [vmem:[%s1593_s15] sm:$0xf] %vm532_vm1, %v531_v48  ;;  %v555_v50 = vsel %vm529_vm2, %v1075_v49, %v498_v28 }
 0x1b5   : > { %v556_v51 = vpack.c.bf16 %v555_v50, %v555_v50 }
 0x1b7   : > { %921 = vst.msk [vmem:[%s1593_s15 + $0x4] sm:$0xf] %vm532_vm1, %v556_v51  ;;  %v540_v53 = vpop.permute.xlu0 %539 }
 0x1b8   : > { %v542_v54 = vsel %vm529_vm2, %v1060_v52, %v540_v53  ;;  %v600_v55 = vpop.permute.xlu1 %599 }
 0x1b9   : > { %v543_v56 = vpack.c.bf16 %v542_v54, %v542_v54  ;;  %v570_v57 = vpop.permute.xlu2 %569 }
 0x1ba   : > { %923 = vst.msk [vmem:[%s1580_s12 + $0x4] sm:$0xf] %vm532_vm1, %v570_v57 }
 0x1bb   : > { %544 = vst.msk [vmem:[%s1587_s17] sm:$0xf] %vm532_vm1, %v543_v56 }
 0x1bf   : > { %v1069_v58 = vpop.permute.xlu0 %1068 }
 0x1c0   : > { %v1071_v60 = vunpack.i.h.bf16 %v1069_v58  ;;  %v1070_v61 = vunpack.i.l.bf16 %v1069_v58  ;;  %v620_v62 = vpop.permute.xlu1 %619 }
 0x1c1   : > { %929 = vst.msk [vmem:[%s1580_s12 + $0xc] sm:$0xf] %vm532_vm1, %v620_v62 }
 0x1c2   : > { %v615_v63 = vsel %vm529_vm2, %v610_v39, %v1071_v60  ;;  %v590_v0 = vsel %vm529_vm2, %v1070_v61, %v1066_v59 }
 0x1c3   : > { %v616_v1 = vpack.c.bf16 %v615_v63, %v615_v63  ;;  %v591_v2 = vpack.c.bf16 %v590_v0, %v590_v0 }
 0x1c5   : > { %928 = vst.msk [vmem:[%s1587_s17 + $0xc] sm:$0xf] %vm532_vm1, %v616_v1 }
 0x1c6   : > { %925 = vst.msk [vmem:[%s1587_s17 + $0x8] sm:$0xf] %vm532_vm1, %v591_v2 }
 0x1c7   : > { %v1079_v3 = vpop.permute.xlu0 %1078 }
 0x1c8   : > { %1230 = shalt.err (!%p1227_p1)
}
 0x1c9   : > { %957 = dma.vmem_to_hbm [thread:$0]  (%p1466_p8), %s667_s10, 256, %s669_s27, %s1631_s24, %s1362_s23, %s1362_s23, %s1364_s8   ;;  %v1076_v4 = vunpack.i.h.bf16 %v1074_v47  ;;  %v1081_v5 = vunpack.i.h.bf16 %v1079_v3  ;;  %v1080_v6 = vunpack.i.l.bf16 %v1079_v3 }
 0x1ca   : > { %s1764_s20 = sld [smem:[#allocation27_spill]]  ;;  %s1651_s1 = sshll.u32 %s647_s28, 4  ;;  %s651_s1 = int_to_ptr.hbm [resolvable:$true] %s1651_s1 }
 0x1cb   : > { %v605_v7 = vsel %vm529_vm2, %v600_v55, %v1081_v5  ;;  %v580_v8 = vsel %vm529_vm2, %v1080_v6, %v1076_v4  ;;  %s684_s10 = sshll.u32 %s1580_s12, 4  ;;  %s1245_s28 = sshra.s32 %s651_s1, 4  ;;  %s1663_s10 = int_to_ptr.vmem [resolvable:$true] %s684_s10  ;;  %s1246_s28 = int_to_ptr.hbm [resolvable:$true] %s1245_s28 }
 0x1cc   : > { %v606_v9 = vpack.c.bf16 %v605_v7, %v605_v7  ;;  %v581_v10 = vpack.c.bf16 %v580_v8, %v580_v8  ;;  %s1247_s29 = scalar_lea.hbm %s1246_s28, 16  ;;  %s1251_s16 = scalar_lea.hbm %s1734_s5, 32 }
 0x1cd   : > { %p1248_p2 = scmp.ne.s32.totalorder %s1246_s28, %s1247_s29  ;;  %p1252_p3 = scmp.lt.s32.totalorder %s1246_s28, %s1734_s5 }
 0x1ce   : > { %927 = vst.msk [vmem:[%s1593_s15 + $0xc] sm:$0xf] %vm532_vm1, %v606_v9  ;;  %p1253_p6 = scmp.lt.s32.totalorder %s1251_s16, %s1247_s29 }
 0x1cf   : > { %924 = vst.msk [vmem:[%s1593_s15 + $0x8] sm:$0xf] %vm532_vm1, %v581_v10  ;;  %v595_v11 = vpop.permute.xlu0 %594  ;;  %p1249_p4 = pnand %p1248_p2, %p1466_p8 }
 0x1d0   : > { %s683_s22 = scalar_lea.hbm %s1764_s20, %s1606_s18  ;;  %s625_s18 = scalar_lea.sflag [#allocation4], %s1550_s3 }
 0x1d1   : > { %s1658_s27 = sshll.u32 %s683_s22, 4  ;;  %p1250_p5 = pneg %p1249_p4  ;;  %s687_s27 = int_to_ptr.hbm [resolvable:$true] %s1658_s27 }
 0x1d2   : > { %p1254_p7 = por %p1253_p6, %p1252_p3 }
 0x1d4   : > { %p1255_p11 = pnand %p1254_p7, %p1250_p5 }
 0x1d6   : > { %1258 = shalt.err (!%p1255_p11)
}
 0x1d7   : > { %956 = dma.vmem_to_hbm [thread:$0]  (%p1466_p8), %s1653_s21, 256, %s651_s1, %s625_s18, %s1362_s23, %s1362_s23, %s1364_s8  }
 0x1d8   : > { %926 = vst.msk [vmem:[%s1580_s12 + $0x8] sm:$0xf] %vm532_vm1, %v595_v11  ;;  %s1273_s3 = sshra.s32 %s687_s27, 4  ;;  %s1279_s7 = scalar_lea.hbm %s1764_s20, 32  ;;  %s1274_s3 = int_to_ptr.hbm [resolvable:$true] %s1273_s3 }
 0x1d9   : > { %s1275_s15 = scalar_lea.hbm %s1274_s3, 16  ;;  %p1280_p1 = scmp.lt.s32.totalorder %s1274_s3, %s1764_s20 }
 0x1da   : > { %p1276_p12 = scmp.ne.s32.totalorder %s1274_s3, %s1275_s15  ;;  %p1281_p2 = scmp.lt.s32.totalorder %s1279_s7, %s1275_s15 }
 0x1dc   : > { %p1277_p13 = pnand %p1276_p12, %p1466_p8  ;;  %p1282_p4 = por %p1281_p2, %p1280_p1 }
 0x1de   : > { %p1278_p0 = pneg %p1277_p13 }
 0x1e0   : > { %p1283_p5 = pnand %p1282_p4, %p1278_p0 }
 0x1e2   : > { %1286 = shalt.err (!%p1283_p5)
}
 0x1e3   : > { %958 = dma.vmem_to_hbm [thread:$0]  (%p1466_p8), %s1663_s10, 256, %s687_s27, %s1631_s24, %s1362_s23, %s1362_s23, %s1364_s8  }
 0x1e4 PF: > { %s1765_s12 = sld [smem:[#allocation19_spill]]  ;;  %p977_p3 = pnand %p897_p10, %p1473_p9 }
 0x1e5   : > { %s1767_s1 = sld [smem:[#allocation21_spill]] }
 0x1e6   : > { %p978_p6 = pneg %p977_p3 }
 0x1ea   : > { %s701_s18 = sand.u32 1, %s1765_s12  }
 0x1eb   : > { %s702_s29 = scalar_lea.sflag [#allocation4], %s701_s18 }
 0x1ec   : > { %1324 = dma.done.wait (%p978_p6), %s702_s29, 256  }
 0x1ed   : > { %1326 = vsyncadd (%p978_p6), %s702_s29, 4294967040  ;;  %s1768_s13 = sadd.s32 4294967294, %s1767_s1  }
 0x1ee   : > { %s711_s9 = sand.u32 1, %s1768_s13  }
 0x1ef   : > { %s712_s14 = scalar_lea.sflag [#allocation12], %s711_s9 }
 0x1f0   : > { %1328 = dma.done.wait (%p978_p6), %s712_s14, 512  }
 0x1f1   : > { %1330 = vsyncadd (%p978_p6), %s712_s14, 4294966784  ;;  %s31_s29 = sadd.s32 1, %s1767_s1   ;;  %s1769_s23 = sld [smem:[#allocation24_spill]] }
 0x1f2   : > { %p28_p8 = scmp.ge.s32.totalorder %s31_s29, 4   ;;  %s1770_s27 = sld [smem:[#allocation20_spill]] }
 0x1f3   : > { %s1771_s28 = sld [smem:[#allocation22_spill]]  ;;  %s1772_s24 = smov %s1337_s25 }
 0x1f4   : > { %s1773_s25 = smov %s1341_s26  ;;  %30 = sbr.rel (!%p28_p8) target bundleno = 15 (0xf), region = 154 }
 0x1f7   : > { %s1774_s26 = smov %s1769_s23 }
 0x1f9   :  { %728 = vsyncpa [#allocation3], 1 }
 0x1fa   :  { %730 = vsyncpa [#allocation3 + $0x1], 1 }
 0x1fb   :  { %731 = vsyncpa [#allocation6], 1 }
 0x1fc   :  { %733 = vsyncpa [#allocation6 + $0x1], 1 }
 0x1fd   :  { %734 = vsyncpa [#allocation9], 1 }
 0x1fe   :  { %735 = vsyncpa [#allocation4], 1 }
 0x1ff   :  { %737 = vsyncpa [#allocation4 + $0x1], 1 }
 0x200   :  { %738 = vsyncpa [#allocation12], 1 }
 0x201   :  { %740 = vsyncpa [#allocation12 + $0x1], 1 }

</bundles_post_ra>
